<compile_context>
chip_gen: v5e
topology: v5e:2x2
jax: 0.10.0
libtpu: 0.0.40
codegen_flags: <defaults>
</compile_context>

<pallas_src>
import functools
from math import sqrt

import jax
import jax.numpy as jnp
from jax import lax
from jax.experimental import pallas as pl
from jax.experimental.pallas import tpu as pltpu


def _round_up(x: int, m: int) -> int:
    return (x + m - 1) // m * m


# ---------------------------------------------------------------------------
# Path A: small table -> VMEM-resident table, gather via one-hot MXU matmul.
# ---------------------------------------------------------------------------
def _embedding_onehot_kernel(idx_ref, table_ref, out_ref, *, scale):
    # idx_ref:   (tb, 1) int32 token ids (VMEM tile)
    # table_ref: (V, D)  embedding table, VMEM-resident (constant index_map)
    # out_ref:   (tb, D) output tile
    tb = idx_ref.shape[0]
    v = table_ref.shape[0]
    ids = idx_ref[...]                                       # (tb, 1)
    cols = lax.broadcasted_iota(jnp.int32, (tb, v), 1)       # (tb, V)
    one_hot = (ids == cols).astype(table_ref.dtype)          # (tb, V)
    gathered = jnp.dot(one_hot, table_ref[...],
                       preferred_element_type=jnp.float32)   # (tb, D) f32
    out_ref[...] = (gathered * scale).astype(out_ref.dtype)  # fused sqrt(d)


# ---------------------------------------------------------------------------
# Path B: large table -> HBM-resident table, per-row DMA ring landing directly
# in the output tile (no intermediate VMEM buffer), deep in-flight ring.
# ---------------------------------------------------------------------------
def _embedding_dma_kernel(idx_ref, table_hbm, out_ref, copy_sems, *,
                          token_block, inflight, scale):
    # idx_ref:    (N_pad,) int32 token ids, scalar-prefetched into SMEM
    # table_hbm:  (V, D) embedding table, resident in HBM
    # out_ref:    (token_block, D) output tile (DMA destination)
    # copy_sems:  (inflight,) DMA semaphore ring
    base = pl.program_id(0) * token_block

    def row_copy(t, tok):
        return pltpu.make_async_copy(
            table_hbm.at[pl.ds(tok, 1), :],
            out_ref.at[pl.ds(t, 1), :],
            copy_sems.at[t % inflight],
        )

    # Prime the ring: keep `inflight` row DMAs outstanding.
    @pl.loop(0, min(inflight, token_block))
    def _(t):
        row_copy(t, idx_ref[base + t]).start()

    # Steady state: for each token, wait for its row, then issue the row
    # `inflight` ahead.  All SMEM index reads happen before the .wait().
    @pl.loop(0, token_block)
    def _(t):
        tok_t = idx_ref[base + t]
        nxt = t + inflight
        nxt_safe = jnp.minimum(nxt, token_block - 1)          # stay in bounds
        tok_nxt = idx_ref[base + nxt_safe]

        row_copy(t, tok_t).wait()       # identical src/dst as the matching start

        @pl.when(nxt < token_block)
        def _():
            row_copy(nxt, tok_nxt).start()

    # Fused sqrt(d) scale, in place on the gathered tile.
    out_ref[...] = (out_ref[...].astype(jnp.float32) * scale).astype(out_ref.dtype)


# ---------------------------------------------------------------------------
# Wrapper / dispatch.
# ---------------------------------------------------------------------------
def embedding_forward(x_idx, table, *, token_block=1024, inflight=32,
                      onehot_vocab_limit=2048,
                      vmem_budget_bytes=40 * 1024 * 1024,
                      force_dma_path=False):
    """Pallas TPU equivalent of nn.Embedding(V, D)(x) * sqrt(D).

    x_idx: (B, S) integer token ids.  table: (V, D) embedding weights.
    Returns (B, S, D) in table.dtype.
    """
    b, s = x_idx.shape
    v, d = table.shape
    n = b * s
    scale = float(sqrt(d))
    out_dtype = table.dtype
    itemsize = jnp.dtype(out_dtype).itemsize

    # Token tile: big enough to amortize the ~0.35 us per-grid-step overhead,
    # small enough that the double-buffered output tile stays inside scoped
    # VMEM on every generation (v5e default scoped limit is 16 MiB of 128 MiB,
    # v7x physical is only 64 MiB).
    max_tb_rows = max(8, ((8 * 1024 * 1024) // max(1, d * itemsize)) // 8 * 8)
    tb = min(_round_up(n, 8), _round_up(token_block, 8), max_tb_rows)
    n_pad = _round_up(n, tb)
    grid = (n_pad // tb,)

    # TODO(synk): nn.Embedding raises on out-of-range indices; here they are
    # clamped instead (no in-kernel error reporting on TPU).
    idx_flat = jnp.clip(x_idx.reshape(n).astype(jnp.int32), 0, v - 1)
    if n_pad != n:
        idx_flat = jnp.pad(idx_flat, (0, n_pad - n))

    # Fast-path VMEM budget: table (single buffer) + double-buffered output
    # tile + double-buffered (lane-padded) index tile + one-hot intermediate.
    table_bytes = v * d * itemsize
    fast_need = (table_bytes
                 + 2 * tb * d * itemsize
                 + 2 * tb * 128 * 4
                 + tb * v * 4
                 + (2 << 20))
    use_onehot = (not force_dma_path
                  and v <= onehot_vocab_limit
                  and fast_need <= vmem_budget_bytes)

    if use_onehot:
        kernel = functools.partial(_embedding_onehot_kernel, scale=scale)
        out_flat = pl.pallas_call(
            kernel,
            out_shape=jax.ShapeDtypeStruct((n_pad, d), out_dtype),
            grid_spec=pltpu.PrefetchScalarGridSpec(
                num_scalar_prefetch=0,
                grid=grid,
                in_specs=[
                    pl.BlockSpec((tb, 1), lambda i: (i, 0)),   # token ids
                    pl.BlockSpec((v, d), lambda i: (0, 0)),    # table, VMEM-resident
                ],
                out_specs=pl.BlockSpec((tb, d), lambda i: (i, 0)),
            ),
            compiler_params=pltpu.CompilerParams(
                dimension_semantics=("parallel",),
                vmem_limit_bytes=int(max(fast_need, 16 * 1024 * 1024)),
            ),
        )(idx_flat.reshape(n_pad, 1), table)
    else:
        dma_need = 2 * tb * d * itemsize + (4 << 20)
        kernel = functools.partial(_embedding_dma_kernel,
                                   token_block=tb, inflight=inflight,
                                   scale=scale)
        out_flat = pl.pallas_call(
            kernel,
            out_shape=jax.ShapeDtypeStruct((n_pad, d), out_dtype),
            grid_spec=pltpu.PrefetchScalarGridSpec(
                num_scalar_prefetch=1,                          # ids -> SMEM
                grid=grid,
                in_specs=[
                    pl.BlockSpec(memory_space=pl.ANY),          # table stays in HBM
                ],
                out_specs=pl.BlockSpec((tb, d), lambda i, idx: (i, 0)),
                scratch_shapes=[
                    pltpu.SemaphoreType.DMA((inflight,)),       # in-flight DMA ring
                ],
            ),
            compiler_params=pltpu.CompilerParams(
                dimension_semantics=("parallel",),
                vmem_limit_bytes=int(max(dma_need, 16 * 1024 * 1024)),
            ),
        )(idx_flat, table)

    return out_flat[:n].reshape(b, s, d)


if __name__ == "__main__":
    # Small, deterministic synthetic setup matching the PyTorch module.
    ukuran_vocab = 64        # vocab size
    dimensi_embedding = 32   # embedding dim
    batch, seq = 2, 8

    key = jax.random.PRNGKey(0)
    k_tbl, k_idx = jax.random.split(key)

    # nn.Embedding default init ~ N(0, 1)
    table = jax.random.normal(k_tbl, (ukuran_vocab, dimensi_embedding),
                              dtype=jnp.float32)
    x = jax.random.randint(k_idx, (batch, seq), 0, ukuran_vocab,
                           dtype=jnp.int32)

    # Reference in plain JAX (same semantics as the PyTorch forward).
    ref = table[x] * jnp.sqrt(jnp.float32(dimensi_embedding))

    # Default dispatch -> one-hot MXU fast path (tiny table fits VMEM).
    out = jax.block_until_ready(embedding_forward(x, table))
    assert out.shape == (batch, seq, dimensi_embedding)
    assert jnp.allclose(out, ref, atol=1e-5, rtol=1e-5)

    # Also exercise the HBM-resident DMA-gather path (used for large vocabs).
    out_dma = jax.block_until_ready(embedding_forward(x, table,
                                                      force_dma_path=True))
    assert jnp.allclose(out_dma, ref, atol=1e-5, rtol=1e-5)

    print("KERNEL_OK")
</pallas_src>

<mosaic_0001>
module attributes {stable_mosaic.version = 11 : i64} {
  func.func @_embedding_onehot_kernel(%arg0: i32, %arg1: memref<16x1xi32, #tpu.memory_space<vmem>>, %arg2: memref<64x32xf32, #tpu.memory_space<vmem>>, %arg3: memref<16x32xf32, #tpu.memory_space<vmem>>) attributes {dimension_semantics = [#tpu.dimension_semantics<parallel>], iteration_bounds = array<i64: 1>, scalar_prefetch = 0 : i64, scratch_operands = 0 : i64, tpu.core_type = #tpu.core_type<tc>, window_params = [{transform_indices = @transform_0, window_bounds = array<i64: 16, 1>}, {pipeline_mode = #tpu.pipeline_mode<synchronous>, transform_indices = @transform_1, window_bounds = array<i64: 64, 32>}, {transform_indices = @transform_2, window_bounds = array<i64: 16, 32>}]} {
    %c0 = arith.constant 0 : index
    %c0_0 = arith.constant 0 : index
    %0 = vector.load %arg1[%c0, %c0_0] : memref<16x1xi32, #tpu.memory_space<vmem>>, vector<16x1xi32>
    %1 = tpu.iota {dimensions = array<i32: 1>} : vector<16x64xi32>
    %2 = vector.broadcast %0 : vector<16x1xi32> to vector<16x64xi32>
    %3 = arith.cmpi eq, %2, %1 : vector<16x64xi32>
    %4 = arith.extui %3 : vector<16x64xi1> to vector<16x64xi32>
    %5 = arith.sitofp %4 : vector<16x64xi32> to vector<16x64xf32>
    %c0_1 = arith.constant 0 : index
    %c0_2 = arith.constant 0 : index
    %6 = vector.load %arg2[%c0_1, %c0_2] : memref<64x32xf32, #tpu.memory_space<vmem>>, vector<64x32xf32>
    %cst = arith.constant dense<0.000000e+00> : vector<16x32xf32>
    %7 = tpu.matmul %5, %6, %cst {dimension_numbers = #tpu.dot_dimension_numbers<[1], [0], [0], [1], [0, 0, 1, 1], [], []>} : vector<16x64xf32>, vector<64x32xf32>, vector<16x32xf32> -> vector<16x32xf32>
    %cst_3 = arith.constant 5.65685415 : f32
    %8 = vector.broadcast %cst_3 : f32 to vector<16x32xf32>
    %9 = arith.mulf %7, %8 : vector<16x32xf32>
    %c0_4 = arith.constant 0 : index
    %c0_5 = arith.constant 0 : index
    %10 = vector.load %arg3[%c0_4, %c0_5] : memref<16x32xf32, #tpu.memory_space<vmem>>, vector<16x32xf32>
    tpu.vector_store %arg3[%c0_4, %c0_5], %9 {strides = array<i32>} : memref<16x32xf32, #tpu.memory_space<vmem>>, vector<16x32xf32>,
    return
  }
  func.func @transform_0(%arg0: i32) -> (i32, i32) {
    %c0_i32 = arith.constant 0 : i32
    %c0_i32_0 = arith.constant 0 : i32
    return %arg0, %c0_i32 : i32, i32
  }
  func.func @transform_1(%arg0: i32) -> (i32, i32) {
    %c0_i32 = arith.constant 0 : i32
    %c0_i32_0 = arith.constant 0 : i32
    %c0_i32_1 = arith.constant 0 : i32
    return %c0_i32, %c0_i32_0 : i32, i32
  }
  func.func @transform_2(%arg0: i32) -> (i32, i32) {
    %c0_i32 = arith.constant 0 : i32
    %c0_i32_0 = arith.constant 0 : i32
    return %arg0, %c0_i32 : i32, i32
  }
}

</mosaic_0001>

<bundles_post_ra>
// kernel: tpu_custom_call.1
= control target key start
LH: loop header
LB: loop body
LE: loop exit
PB: predicated region body
PF: predicated region fallthrough
CT: control target
= control target key end

     0   :  { %v133_v2 = vmov 0   ;;  %s186_s0 = inlined_call_operand.vmem [shape: s32[16,1], index: 0, kind: input, shape index: {}]   ;;  %s187_s1 = inlined_call_operand.vmem [shape: f32[64,32], index: 1, kind: input, shape index: {}]   ;;  %s188_s2 = inlined_call_operand.hbm [shape: f32[16,32], index: 2, kind: output, shape index: {}]  }
   0x1   :  { %v12_v0 = vld [vmem:[%s186_s0] sm:$0xff]  ;;  %v35_v1 = vld [vmem:[%s187_s1 + $0x38] sm:$0xff]  ;;  %106 = vset.pattern.permute.xlu0 %v133_v2  ;;  %v34_v3 = vld [vmem:[%s187_s1 + $0x30] sm:$0xff] }
   0x2   :  { %51 = vmatpush.msra.mxu0 %v35_v1  ;;  %17 = vperm.xlu0 %106, %v12_v0   ;;  %v33_v4 = vld [vmem:[%s187_s1 + $0x28] sm:$0xff] }
   0x3   :  { %93 = vmatpush.msra.mxu1 %v35_v1 }
   0x4   :  { %52 = vmatpush.msra.mxu0 %v34_v3 }
   0x5   :  { %7 = vsyncpa [#allocation3], 0  ;;  %v32_v5 = vld [vmem:[%s187_s1 + $0x20] sm:$0xff]  ;;  %94 = vmatpush.msra.mxu1 %v34_v3  ;;  %v31_v6 = vld [vmem:[%s187_s1 + $0x18] sm:$0xff]  ;;  %v14_v11 = vlaneseq  ;;  %vm36_vm0 = vcmask 523264   ;;  %v134_v14 = vmov 0.0  }
   0x6   :  { %53 = vmatpush.msra.mxu0 %v33_v4  ;;  %v13_v7 = vld [vmem:[%s186_s0 + $0x8] sm:$0xff]  ;;  %v30_v8 = vld [vmem:[%s187_s1 + $0x10] sm:$0xff]  ;;  %v28_v10 = vld [vmem:[%s187_s1] sm:$0xff]  ;;  %vm68_vm3 = vcmask 261120   ;;  %s135_s0 = smov [#allocation2]   ;;  %s77_s3 = sshll.u32 %s188_s2, 4  ;;  %s78_s3 = int_to_ptr.hbm [resolvable:$true] %s77_s3 }
   0x7   :  { %95 = vmatpush.msra.mxu1 %v33_v4  ;;  %v29_v9 = vld [vmem:[%s187_s1 + $0x8] sm:$0xff]  ;;  %v15_v12 = vand.u32 127, %v14_v11  ;;  %s75_s1 = sshll.u32 %s135_s0, 4  ;;  %s136_s4 = smov 128   ;;  %s76_s1 = int_to_ptr.vmem [resolvable:$true] %s75_s1 }
   0x8   :  { %54 = vmatpush.msra.mxu0 %v32_v5  ;;  %s137_s5 = smov 8  }
   0x9   :  { %96 = vmatpush.msra.mxu1 %v32_v5 }
   0xa   :  { %55 = vmatpush.msra.mxu0 %v31_v6  ;;  %20 = vperm.xlu0 %106, %v13_v7  }
   0xb   :  { %97 = vmatpush.msra.mxu1 %v31_v6 }
   0xc   :  { %56 = vmatpush.msra.mxu0 %v30_v8 }
   0xd   :  { %98 = vmatpush.msra.mxu1 %v30_v8 }
   0xe   :  { %57 = vmatpush.msra.mxu0 %v29_v9 }
   0xf   :  { %99 = vmatpush.msra.mxu1 %v29_v9 }
  0x10   :  { %58 = vmatpush.msra.mxu0 %v28_v10 }
  0x11   :  { %100 = vmatpush.msra.mxu1 %v28_v10 }
  0x74   :  { %v18_v13 = vpop.permute.xlu0 %17 }
  0x75   :  { %vm22_vm1 = vcmp.eq.s32.totalorder %v18_v13, %v15_v12 }
  0x76   :  { %v89_v15 = vsel %vm22_vm1, 1.0, %v134_v14 }
  0x77   :  { %91 = vmatmul.msk.f32.vlgmr.msra.gmra.mxu0 %vm36_vm0, %v89_v15 }
  0x7c   :  { %v21_v16 = vpop.permute.xlu0 %20 }
  0x7d   :  { %vm23_vm2 = vcmp.eq.s32.totalorder %v21_v16, %v15_v12 }
  0x7e   :  { %v90_v17 = vsel %vm23_vm2, 1.0, %v134_v14 }
  0x7f   :  { %92 = vmatmul.msk.f32.vlgmr.msra.gmra.mxu1 %vm36_vm0, %v90_v17 }
  0xf4   :  { %v60_v18 = vpop.f32.mrf.mxu0 }
  0xf5   :  { %v66_v19 = vmul.f32 5.656854, %v60_v18 }
  0xf7   :  { %69 = vst.msk [vmem:[#allocation2] sm:$0xff] %vm68_vm3, %v66_v19 }
  0xfc   :  { %v63_v20 = vpop.f32.mrf.mxu1 }
  0xfd   :  { %v67_v21 = vmul.f32 5.656854, %v63_v20 }
  0xff   :  { %70 = vst.msk [vmem:[#allocation2 + $0x8] sm:$0xff] %vm68_vm3, %v67_v21 }
 0x100   :  { %83 = dma.vmem_to_hbm [thread:$0]  %s76_s1, 256, %s78_s3, [#allocation3], %s136_s4, %s136_s4, %s137_s5  }
 0x101   :  { %131 = dma.done.wait [#allocation3], 256  }
 0x102   :  { %132 = vsyncadd [#allocation3], 4294967040 }
 0x103   :  { %88 = vsyncpa [#allocation3], 1 }

</bundles_post_ra>
